<compile_context>
chip_gen: v7x
topology: tpu7x:2x2x1
jax: 0.10.0
libtpu: 0.0.40
codegen_flags: <defaults>
</compile_context>

<pallas_src>
import jax
import jax.numpy as jnp
import numpy as np
from jax.experimental import pallas as pl
from jax.experimental.pallas import tpu as pltpu

KH = KW = 3
BN_EPS = 1e-5
LANE = 128

# Matmul operand dtype.  Set to jnp.bfloat16 for production FPN channel counts
# (~2x MXU throughput on v5e/v6e/v7x; accumulation stays f32 via
# preferred_element_type).  Kept f32 here so the tiny test matches the f32
# PyTorch module to tight tolerance.
MATMUL_DTYPE = jnp.float32


def conv_stats_kernel(x_ref, w_ref, conv_ref, stats_ref):
    # x_ref:     (TH+2, W+2, Cin)      halo'd input row-tile
    # w_ref:     (KH*KW*Cin, Cout_p)   taps folded into K, Cout padded to 128
    # conv_ref:  (TH, W, Cout_p)       conv output tile (f32)
    # stats_ref: (2, Cout_p)           per-tile [sum, sum_sq] per channel
    TH, W, Cout_p = conv_ref.shape
    Cin = x_ref.shape[-1]

    x = x_ref[...]                                     # single VMEM load
    # im2col: fold the 9 taps into the contraction axis -> one MXU matmul.
    taps = []
    for ki in range(KH):
        for kj in range(KW):
            taps.append(x[ki:ki + TH, kj:kj + W, :].reshape(TH * W, Cin))
    patch = jnp.concatenate(taps, axis=1)              # (TH*W, KH*KW*Cin)

    acc = jnp.dot(patch.astype(MATMUL_DTYPE), w_ref[...],
                  preferred_element_type=jnp.float32)  # (TH*W, Cout_p) f32

    # Streaming BN statistics: per-tile partial sums in f32 accumulators.
    s = jnp.sum(acc, axis=0, keepdims=True)            # (1, Cout_p)
    ss = jnp.sum(acc * acc, axis=0, keepdims=True)     # (1, Cout_p)
    stats_ref[...] = jnp.concatenate([s, ss], axis=0)

    conv_ref[...] = acc.reshape(TH, W, Cout_p)


def bn_relu_kernel(conv_ref, scale_ref, shift_ref, o_ref):
    # conv_ref/o_ref: (TH, W, Cout_p)   scale/shift: (1, Cout_p)  (lane-dense)
    y = conv_ref[...] * scale_ref[...] + shift_ref[...]
    o_ref[...] = jnp.maximum(y, 0.0)


def conv_block_forward(x_nchw, weight_oihw, bias, gamma, beta, *, tile_h=8):
    """ConvBlock.forward: (N, Cin, H, W) -> (N, Cout, H, W).

    `bias` is accepted for parity with nn.Conv2d but not applied in the kernel:
    a per-channel constant before training-mode BatchNorm is exactly cancelled
    by the mean subtraction.
    """
    del bias
    N, Cin, H, W = x_nchw.shape
    Cout = weight_oihw.shape[0]
    Cout_p = ((Cout + LANE - 1) // LANE) * LANE

    TH = tile_h if H % tile_h == 0 else H              # row-tile height
    nT = H // TH
    num_tiles = N * nT

    # NCHW -> NHWC, zero-pad spatially (padding=1), then build halo'd row tiles
    # so each grid step owns an independent (TH+2, W+2, Cin) block.
    x_nhwc = jnp.transpose(x_nchw, (0, 2, 3, 1)).astype(jnp.float32)
    x_pad = jnp.pad(x_nhwc, ((0, 0), (1, 1), (1, 1), (0, 0)))
    x_tiles = jnp.stack(
        [x_pad[:, t * TH:t * TH + TH + 2] for t in range(nT)], axis=1
    ).reshape(num_tiles, TH + 2, W + 2, Cin)

    # (Cout, Cin, KH, KW) -> (KH*KW*Cin, Cout_p): taps folded into K, output
    # channels zero-padded so stores and the MXU N-dim are lane-dense.
    w = jnp.transpose(weight_oihw, (2, 3, 1, 0)).reshape(KH * KW * Cin, Cout)
    w = jnp.pad(w, ((0, 0), (0, Cout_p - Cout))).astype(MATMUL_DTYPE)

    parallel = pltpu.CompilerParams(dimension_semantics=("parallel",))

    # ---- pass 1: tiled conv + per-tile BN statistics ----
    conv_tiles, stats = pl.pallas_call(
        conv_stats_kernel,
        grid=(num_tiles,),
        in_specs=[
            pl.BlockSpec((None, TH + 2, W + 2, Cin), lambda t: (t, 0, 0, 0)),
            pl.BlockSpec((KH * KW * Cin, Cout_p), lambda t: (0, 0)),
        ],
        out_specs=[
            pl.BlockSpec((None, TH, W, Cout_p), lambda t: (t, 0, 0, 0)),
            pl.BlockSpec((None, 2, Cout_p), lambda t: (t, 0, 0)),
        ],
        out_shape=[
            jax.ShapeDtypeStruct((num_tiles, TH, W, Cout_p), jnp.float32),
            jax.ShapeDtypeStruct((num_tiles, 2, Cout_p), jnp.float32),
        ],
        compiler_params=parallel,
    )(x_tiles, w)

    # ---- tiny cross-tile reduction + BN fold (O(Cout) work, done in XLA) ----
    count = jnp.float32(N * H * W)
    total = jnp.sum(stats, axis=0)                          # (2, Cout_p)
    mean = total[0] / count
    var = jnp.maximum(total[1] / count - mean * mean, 0.0)  # biased variance
    gamma_p = jnp.pad(gamma.astype(jnp.float32), (0, Cout_p - Cout))
    beta_p = jnp.pad(beta.astype(jnp.float32), (0, Cout_p - Cout))
    scale1 = gamma_p * jax.lax.rsqrt(var + BN_EPS)
    shift1 = beta_p - mean * scale1
    scale = scale1.reshape(1, Cout_p)
    shift = shift1.reshape(1, Cout_p)

    # ---- pass 2: tiled normalize + ReLU (lane-dense stores) ----
    y_tiles = pl.pallas_call(
        bn_relu_kernel,
        grid=(num_tiles,),
        in_specs=[
            pl.BlockSpec((None, TH, W, Cout_p), lambda t: (t, 0, 0, 0)),
            pl.BlockSpec((1, Cout_p), lambda t: (0, 0)),
            pl.BlockSpec((1, Cout_p), lambda t: (0, 0)),
        ],
        out_specs=pl.BlockSpec((None, TH, W, Cout_p), lambda t: (t, 0, 0, 0)),
        out_shape=jax.ShapeDtypeStruct((num_tiles, TH, W, Cout_p), jnp.float32),
        compiler_params=parallel,
    )(conv_tiles, scale, shift)

    y = y_tiles.reshape(N, nT * TH, W, Cout_p)[..., :Cout]
    return jnp.transpose(y, (0, 3, 1, 2))                   # back to NCHW


def reference_forward(x, w, b, gamma, beta):
    """Pure-JAX reference of the same forward pass (NCHW, f32)."""
    conv = jax.lax.conv_general_dilated(
        x, w, window_strides=(1, 1), padding=((1, 1), (1, 1)),
        dimension_numbers=("NCHW", "OIHW", "NCHW"))
    conv = conv + b.reshape(1, -1, 1, 1)
    mean = conv.mean(axis=(0, 2, 3), keepdims=True)
    var = ((conv - mean) ** 2).mean(axis=(0, 2, 3), keepdims=True)
    y = (conv - mean) / jnp.sqrt(var + BN_EPS)
    y = y * gamma.reshape(1, -1, 1, 1) + beta.reshape(1, -1, 1, 1)
    return jnp.maximum(y, 0.0)


if __name__ == "__main__":
    # Small shapes consistent with ConvBlock(in_channels=8, out_channels=16).
    N, Cin, Cout, H, W = 2, 8, 16, 16, 16

    key = jax.random.PRNGKey(0)
    k_x, k_w, k_b = jax.random.split(key, 3)

    x = jax.random.normal(k_x, (N, Cin, H, W), dtype=jnp.float32)

    fan_in = Cin * KH * KW
    bound = 1.0 / np.sqrt(fan_in)
    weight = jax.random.uniform(k_w, (Cout, Cin, KH, KW),
                                minval=-bound, maxval=bound, dtype=jnp.float32)
    bias = jax.random.uniform(k_b, (Cout,), minval=-bound, maxval=bound,
                              dtype=jnp.float32)
    gamma = jnp.ones((Cout,), jnp.float32)   # BatchNorm2d default weight init
    beta = jnp.zeros((Cout,), jnp.float32)   # BatchNorm2d default bias init

    out = jax.block_until_ready(conv_block_forward(x, weight, bias, gamma, beta))
    ref = jax.block_until_ready(reference_forward(x, weight, bias, gamma, beta))
    np.testing.assert_allclose(np.asarray(out), np.asarray(ref),
                               rtol=1e-4, atol=1e-4)

    print("KERNEL_OK")
</pallas_src>

<mosaic_0001>
module attributes {stable_mosaic.version = 11 : i64} {
  func.func @conv_stats_kernel(%arg0: i32, %arg1: memref<1x10x18x8xf32, #tpu.memory_space<vmem>>, %arg2: memref<72x128xf32, #tpu.memory_space<vmem>>, %arg3: memref<1x8x16x128xf32, #tpu.memory_space<vmem>>, %arg4: memref<1x2x128xf32, #tpu.memory_space<vmem>>) attributes {dimension_semantics = [#tpu.dimension_semantics<parallel>], iteration_bounds = array<i64: 4>, scalar_prefetch = 0 : i64, scratch_operands = 0 : i64, tpu.core_type = #tpu.core_type<tc>, window_params = [{transform_indices = @transform_0, window_bounds = array<i64: 1, 10, 18, 8>}, {pipeline_mode = #tpu.pipeline_mode<synchronous>, transform_indices = @transform_1, window_bounds = array<i64: 72, 128>}, {transform_indices = @transform_2, window_bounds = array<i64: 1, 8, 16, 128>}, {transform_indices = @transform_3, window_bounds = array<i64: 1, 2, 128>}]} {
    %c0 = arith.constant 0 : index
    %c0_0 = arith.constant 0 : index
    %c0_1 = arith.constant 0 : index
    %c0_2 = arith.constant 0 : index
    %0 = vector.load %arg1[%c0, %c0_0, %c0_1, %c0_2] : memref<1x10x18x8xf32, #tpu.memory_space<vmem>>, vector<1x10x18x8xf32>
    %1 = vector.shape_cast %0 : vector<1x10x18x8xf32> to vector<10x18x8xf32>
    %2 = vector.extract_strided_slice %1 {offsets = [0, 0, 0], sizes = [8, 16, 8], strides = [1, 1, 1]} : vector<10x18x8xf32> to vector<8x16x8xf32>
    %3 = vector.shape_cast %2 : vector<8x16x8xf32> to vector<128x8xf32>
    %4 = vector.extract_strided_slice %1 {offsets = [0, 1, 0], sizes = [8, 16, 8], strides = [1, 1, 1]} : vector<10x18x8xf32> to vector<8x16x8xf32>
    %5 = vector.shape_cast %4 : vector<8x16x8xf32> to vector<128x8xf32>
    %6 = vector.extract_strided_slice %1 {offsets = [0, 2, 0], sizes = [8, 16, 8], strides = [1, 1, 1]} : vector<10x18x8xf32> to vector<8x16x8xf32>
    %7 = vector.shape_cast %6 : vector<8x16x8xf32> to vector<128x8xf32>
    %8 = vector.extract_strided_slice %1 {offsets = [1, 0, 0], sizes = [8, 16, 8], strides = [1, 1, 1]} : vector<10x18x8xf32> to vector<8x16x8xf32>
    %9 = vector.shape_cast %8 : vector<8x16x8xf32> to vector<128x8xf32>
    %10 = vector.extract_strided_slice %1 {offsets = [1, 1, 0], sizes = [8, 16, 8], strides = [1, 1, 1]} : vector<10x18x8xf32> to vector<8x16x8xf32>
    %11 = vector.shape_cast %10 : vector<8x16x8xf32> to vector<128x8xf32>
    %12 = vector.extract_strided_slice %1 {offsets = [1, 2, 0], sizes = [8, 16, 8], strides = [1, 1, 1]} : vector<10x18x8xf32> to vector<8x16x8xf32>
    %13 = vector.shape_cast %12 : vector<8x16x8xf32> to vector<128x8xf32>
    %14 = vector.extract_strided_slice %1 {offsets = [2, 0, 0], sizes = [8, 16, 8], strides = [1, 1, 1]} : vector<10x18x8xf32> to vector<8x16x8xf32>
    %15 = vector.shape_cast %14 : vector<8x16x8xf32> to vector<128x8xf32>
    %16 = vector.extract_strided_slice %1 {offsets = [2, 1, 0], sizes = [8, 16, 8], strides = [1, 1, 1]} : vector<10x18x8xf32> to vector<8x16x8xf32>
    %17 = vector.shape_cast %16 : vector<8x16x8xf32> to vector<128x8xf32>
    %18 = vector.extract_strided_slice %1 {offsets = [2, 2, 0], sizes = [8, 16, 8], strides = [1, 1, 1]} : vector<10x18x8xf32> to vector<8x16x8xf32>
    %19 = vector.shape_cast %18 : vector<8x16x8xf32> to vector<128x8xf32>
    %20 = tpu.concatenate %3, %5, %7, %9, %11, %13, %15, %17, %19 in 1 : vector<128x8xf32>, vector<128x8xf32>, vector<128x8xf32>, vector<128x8xf32>, vector<128x8xf32>, vector<128x8xf32>, vector<128x8xf32>, vector<128x8xf32>, vector<128x8xf32> -> vector<128x72xf32>
    %c0_3 = arith.constant 0 : index
    %c0_4 = arith.constant 0 : index
    %21 = vector.load %arg2[%c0_3, %c0_4] : memref<72x128xf32, #tpu.memory_space<vmem>>, vector<72x128xf32>
    %cst = arith.constant dense<0.000000e+00> : vector<128x128xf32>
    %22 = tpu.matmul %20, %21, %cst {dimension_numbers = #tpu.dot_dimension_numbers<[1], [0], [0], [1], [0, 0, 1, 1], [], []>} : vector<128x72xf32>, vector<72x128xf32>, vector<128x128xf32> -> vector<128x128xf32>
    %cst_5 = arith.constant dense<0.000000e+00> : vector<128xf32>
    %23 = vector.multi_reduction <add>, %22, %cst_5 [0] : vector<128x128xf32> to vector<128xf32>
    %24 = vector.shape_cast %23 : vector<128xf32> to vector<1x128xf32>
    %25 = arith.mulf %22, %22 : vector<128x128xf32>
    %cst_6 = arith.constant dense<0.000000e+00> : vector<128xf32>
    %26 = vector.multi_reduction <add>, %25, %cst_6 [0] : vector<128x128xf32> to vector<128xf32>
    %27 = vector.shape_cast %26 : vector<128xf32> to vector<1x128xf32>
    %28 = tpu.concatenate %24, %27 in 0 : vector<1x128xf32>, vector<1x128xf32> -> vector<2x128xf32>
    %c0_7 = arith.constant 0 : index
    %c0_8 = arith.constant 0 : index
    %c0_9 = arith.constant 0 : index
    %29 = vector.load %arg4[%c0_7, %c0_8, %c0_9] : memref<1x2x128xf32, #tpu.memory_space<vmem>>, vector<1x2x128xf32>
    %30 = vector.shape_cast %29 : vector<1x2x128xf32> to vector<2x128xf32>
    %31 = vector.shape_cast %28 : vector<2x128xf32> to vector<1x2x128xf32>
    tpu.vector_store %arg4[%c0_7, %c0_8, %c0_9], %31 {strides = array<i32>} : memref<1x2x128xf32, #tpu.memory_space<vmem>>, vector<1x2x128xf32>,
    %32 = vector.shape_cast %22 : vector<128x128xf32> to vector<8x16x128xf32>
    %c0_10 = arith.constant 0 : index
    %c0_11 = arith.constant 0 : index
    %c0_12 = arith.constant 0 : index
    %c0_13 = arith.constant 0 : index
    %33 = vector.load %arg3[%c0_10, %c0_11, %c0_12, %c0_13] : memref<1x8x16x128xf32, #tpu.memory_space<vmem>>, vector<1x8x16x128xf32>
    %34 = vector.shape_cast %33 : vector<1x8x16x128xf32> to vector<8x16x128xf32>
    %35 = vector.shape_cast %32 : vector<8x16x128xf32> to vector<1x8x16x128xf32>
    tpu.vector_store %arg3[%c0_10, %c0_11, %c0_12, %c0_13], %35 {strides = array<i32>} : memref<1x8x16x128xf32, #tpu.memory_space<vmem>>, vector<1x8x16x128xf32>,
    return
  }
  func.func @transform_0(%arg0: i32) -> (i32, i32, i32, i32) {
    %c0_i32 = arith.constant 0 : i32
    %c0_i32_0 = arith.constant 0 : i32
    %c0_i32_1 = arith.constant 0 : i32
    %c0_i32_2 = arith.constant 0 : i32
    return %arg0, %c0_i32, %c0_i32_0, %c0_i32_1 : i32, i32, i32, i32
  }
  func.func @transform_1(%arg0: i32) -> (i32, i32) {
    %c0_i32 = arith.constant 0 : i32
    %c0_i32_0 = arith.constant 0 : i32
    %c0_i32_1 = arith.constant 0 : i32
    return %c0_i32, %c0_i32_0 : i32, i32
  }
  func.func @transform_2(%arg0: i32) -> (i32, i32, i32, i32) {
    %c0_i32 = arith.constant 0 : i32
    %c0_i32_0 = arith.constant 0 : i32
    %c0_i32_1 = arith.constant 0 : i32
    %c0_i32_2 = arith.constant 0 : i32
    return %arg0, %c0_i32, %c0_i32_0, %c0_i32_1 : i32, i32, i32, i32
  }
  func.func @transform_3(%arg0: i32) -> (i32, i32, i32) {
    %c0_i32 = arith.constant 0 : i32
    %c0_i32_0 = arith.constant 0 : i32
    %c0_i32_1 = arith.constant 0 : i32
    return %arg0, %c0_i32, %c0_i32_0 : i32, i32, i32
  }
}

</mosaic_0001>

<bundles_post_ra>
// kernel: tpu_custom_call.1
= control target key start
LH: loop header
LB: loop body
LE: loop exit
PB: predicated region body
PF: predicated region fallthrough
CT: control target
= control target key end

     0   :  { %9 = vsyncpa [#allocation3], 0  ;;  %s2297_s0 = inlined_call_operand.vmem [shape: f32[4,10,18,8], index: 0, kind: input, shape index: {}]   ;;  %s2298_s1 = inlined_call_operand.vmem [shape: f32[72,128], index: 1, kind: input, shape index: {}]   ;;  %s2299_s2 = inlined_call_operand.hbm [shape: f32[4,8,16,128], index: 2, kind: output, shape index: {0}]   ;;  %s2300_s3 = inlined_call_operand.hbm [shape: f32[4,2,128], index: 3, kind: output, shape index: {1}]  }
   0x1   :  { %11 = vsyncpa [#allocation3 + $0x1], 0 }
   0x2   :  { %12 = vsyncpa [#allocation5], 0 }
   0x3   :  { %14 = vsyncpa [#allocation5 + $0x1], 0  ;;  %s1573_s12 = smov 0   ;;  %s1575_s13 = smov 0  }
   0x4   :  { %s1577_s14 = smov 0   ;;  %s1579_s15 = smov 0  }
   0x5 LB: > { %s1594_s16 = sadd.s32 4294967295, %s1540_s15   ;;  %s1268_s17 = sadd.s32 4294967294, %s1540_s15   ;;  %s1540_s15 = sphi %s1579_s15, %s2306_s15   ;;  %s1536_s14 = sphi %s1577_s14, %s2305_s14   ;;  %s1532_s13 = sphi %s1575_s13, %s2304_s13   ;;  %s1528_s12 = sphi %s1573_s12, %s2303_s12  }
   0x6   : > { %s1598_s18 = sadd.s32 1, %s1540_s15   ;;  %s74_s19 = sadd.s32 1, %s1536_s14 }
   0x7   : > { %s71_s20 = ssub.s32 %s1540_s15, %s1598_s18  ;;  %p84_p0 = scmp.ne.s32.totalorder %s1536_s14, %s1532_s13 }
   0x8   : > { %p72_p1 = scmp.eq.s32.totalorder %s71_s20, 0  ;;  %p85_p2 = scmp.eq.s32.totalorder %s1594_s16, 3 }
   0x9   : > { %p90_p3 = scmp.ne.s32.totalorder %s1532_s13, %s1528_s12  ;;  %p91_p4 = scmp.eq.s32.totalorder %s1268_s17, 3 }
   0xa   : > { %s1609_s21 = scalar_select %p72_p1, %s1536_s14, %s74_s19  }
   0xb   : > { %p1611_p5 = por %p85_p2, %p84_p0  ;;  %p1615_p6 = por %p91_p4, %p90_p3 }
   0xc   : > { %p1271_p7 = scmp.ge.s32.totalorder %s1540_s15, 1  ;;  %p146_p8 = scmp.lt.s32.totalorder %s1540_s15, 5 }
   0xe   : > { %p147_p9 = pnand %p1271_p7, %p146_p8 }
   0xf   : > { %p175_p10 = scmp.lt.s32.totalorder (!%p147_p9), %s1594_s16, 3  ;;  %vm275_vm0 = vcmask (!%p147_p9), 1045504   ;;  %s1542_s29 = smov (!%p147_p9), 24   ;;  %vm234_vm1 = vcmask (!%p147_p9), 1046528   ;;  %v862_v24 = vld [vmem:[%s2298_s1] sm:$0xff] (!%p147_p9)  ;;  %v863_v25 = vld [vmem:[%s2298_s1 + $0x8] sm:$0xff] (!%p147_p9) }
  0x10   : > { %150 = sbr.rel (%p147_p9) target bundleno = 655 (0x28f), region = 28  ;;  %s1543_s30 = smov (!%p147_p9), 16   ;;  %v1366_v26 = vpack.c.bf16 (!%p147_p9), %v863_v25, %v862_v24  ;;  %v864_v28 = vld [vmem:[%s2298_s1 + $0x10] sm:$0xff] (!%p147_p9)  ;;  %v865_v29 = vld [vmem:[%s2298_s1 + $0x18] sm:$0xff] (!%p147_p9)  ;;  %v866_v34 = vld [vmem:[%s2298_s1 + $0x20] sm:$0xff] (!%p147_p9)  ;;  %vm726_vm2 = vcmask (!%p147_p9), 64512  }
  0x11   : > { %s1544_s4 = smov (!%p147_p9), 8   ;;  %s1545_s5 = smov (!%p147_p9), 32   ;;  %v1370_v30 = vpack.c.bf16 (!%p147_p9), %v865_v29, %v864_v28  ;;  %v867_v35 = vld [vmem:[%s2298_s1 + $0x28] sm:$0xff] (!%p147_p9)  ;;  %v868_v39 = vld [vmem:[%s2298_s1 + $0x30] sm:$0xff] (!%p147_p9)  ;;  %v869_v40 = vld [vmem:[%s2298_s1 + $0x38] sm:$0xff] (!%p147_p9)  ;;  %vm743_vm3 = vcmask (!%p147_p9), 130048  }
  0x12   : > { %s1546_s10 = smov (!%p147_p9), 40   ;;  %1367 = vmatprep.subr.bf16.mxu0 (!%p147_p9), %v1366_v26  ;;  %1382 = vmatprep.subr.bf16.mxu1 (!%p147_p9), %v1366_v26  ;;  %s1547_s6 = smov (!%p147_p9), 48   ;;  %v1374_v36 = vpack.c.bf16 (!%p147_p9), %v867_v35, %v866_v34  ;;  %v1378_v42 = vpack.c.bf16 (!%p147_p9), %v869_v40, %v868_v39  ;;  %v870_v44 = vld [vmem:[%s2298_s1 + $0x40] sm:$0xff] (!%p147_p9)  ;;  %vm760_vm4 = vcmask (!%p147_p9), 195584   ;;  %vm777_vm5 = vcmask (!%p147_p9), 261120  }
  0x13   : > { %1369 = vmatpush3.bf16.msra.mxu0 (!%p147_p9), %v1366_v26  ;;  %1387 = vmatpush3.bf16.msra.mxu1 (!%p147_p9), %v1366_v26  ;;  %s1548_s17 = smov (!%p147_p9), 56   ;;  %vm794_vm6 = vcmask (!%p147_p9), 326656   ;;  %vm811_vm7 = vcmask (!%p147_p9), 392192   ;;  %vm828_vm8 = vcmask (!%p147_p9), 457728   ;;  %vm845_vm9 = vcmask (!%p147_p9), 523264   ;;  %s1550_s8 = smov (!%p147_p9), [#allocation2]  }
  0x14   : > { %1371 = vmatprep.subr.bf16.mxu0 (!%p147_p9), %v1370_v30  ;;  %1383 = vmatprep.subr.bf16.mxu1 (!%p147_p9), %v1370_v30  ;;  %vm871_vm10 = vcmask (!%p147_p9), 588800   ;;  %s1450_s9 = sshll.u32 (!%p147_p9), %s1550_s8, 4  ;;  %s1451_s9 = int_to_ptr.vmem [resolvable:$false] %s1450_s9 }
  0x15   : > { %s1452_s11 = scalar_lea.vmem (!%p147_p9), %s1451_s9, 4096 }
  0x17   : > { %s176_s24 = scalar_select %p175_p10, %s1594_s16, 3  ;;  %1373 = vmatpush3.bf16.msra.mxu0 %v1370_v30  ;;  %1388 = vmatpush3.bf16.msra.mxu1 %v1370_v30 }
  0x18   : > { %1375 = vmatprep.subr.bf16.mxu0 %v1374_v36  ;;  %1384 = vmatprep.subr.bf16.mxu1 %v1374_v36 }
  0x19   : > { %s1392_s25 = smul.u32 240, %s176_s24  ;;  %s1549_s24 = smov 64  }
  0x1b   : > { %s1626_s28 = scalar_lea.vmem %s2297_s0, %s1392_s25  ;;  %1377 = vmatpush3.bf16.msra.mxu0 %v1374_v36  ;;  %1389 = vmatpush3.bf16.msra.mxu1 %v1374_v36 }
  0x1c   : > { %v1629_v0 = vld [vmem:[%s1626_s28 + $0x20] sm:$0xff]  ;;  %v1632_v1 = vld [vmem:[%s1626_s28 + $0x18] sm:$0xff]  ;;  %v1642_v3 = vld [vmem:[%s1626_s28 + $0x8] sm:$0xff]  ;;  %1379 = vmatprep.subr.bf16.mxu0 %v1378_v42  ;;  %1385 = vmatprep.subr.bf16.mxu1 %v1378_v42 }
  0x1d   : > { %v1635_v2 = vld [vmem:[%s1626_s28] sm:$0xff]  ;;  %440 = vrot.lane.b32.xlu1 %v1629_v0, %s1542_s29  ;;  %438 = vrot.lane.b32.xlu0 %v1632_v1, %s1542_s29  ;;  %v182_v6 = vld [vmem:[%s1626_s28 + $0x10] sm:$0x3]  ;;  %v277_v7 = vrot.slane %v1642_v3, 2  ;;  %v236_v8 = vrot.slane %v1642_v3, 1  ;;  %v240_v15 = vrot.slane %v1632_v1, 1 }
  0x1e   : > { %v276_v4 = vrot.slane %v1635_v2, 2  ;;  %v235_v5 = vrot.slane %v1635_v2, 1  ;;  %v279_v9 = vrot.slane %v182_v6, 2  ;;  %v238_v10 = vrot.slane %v182_v6, 1  ;;  %v185_v17 = vld [vmem:[%s1626_s28 + $0x28] sm:$0x3] }
  0x1f   : > { %v241_v16 = vrot.slane %v1629_v0, 1  ;;  %v281_v19 = vrot.slane %v1632_v1, 2  ;;  %v282_v20 = vrot.slane %v1629_v0, 2  ;;  %v243_v21 = vrot.slane %v185_v17, 1  ;;  %v1684_v31 = vld [vmem:[%s1626_s28 + $0x30] sm:$0xff]  ;;  %v1688_v33 = vld [vmem:[%s1626_s28 + $0x38] sm:$0xff]  ;;  %1381 = vmatpush3.bf16.msra.mxu0 %v1378_v42  ;;  %1390 = vmatpush3.bf16.msra.mxu1 %v1378_v42 }
  0x20   : > { %v278_v11 = vsel %vm275_vm0, %v276_v4, %v277_v7  ;;  %v237_v12 = vsel %vm234_vm1, %v235_v5, %v236_v8  ;;  %v280_v13 = vsel %vm275_vm0, %v277_v7, %v279_v9  ;;  %v239_v14 = vsel %vm234_vm1, %v236_v8, %v238_v10  ;;  %v188_v43 = vld [vmem:[%s1626_s28 + $0x40] sm:$0x3]  ;;  %1340 = vmatprep.subr.mxu0 %v870_v44  ;;  %v1735_v52 = vld [vmem:[%s1626_s28 + $0x48] sm:$0xff]  ;;  %v1738_v53 = vld [vmem:[%s1626_s28 + $0x50] sm:$0xff] }
  0x21   : > { %390 = vrot.lane.b32.xlu1 %v278_v11, %s1543_s30  ;;  %342 = vrot.lane.b32.xlu0 %v237_v12, %s1544_s4  ;;  %v242_v18 = vsel %vm234_vm1, %v240_v15, %v241_v16  ;;  %v283_v22 = vsel %vm275_vm0, %v281_v19, %v282_v20  ;;  %v244_v23 = vsel %vm234_vm1, %v241_v16, %v243_v21  ;;  %v284_v27 = vrot.slane %v185_v17, 2  ;;  %v191_v57 = vld [vmem:[%s1626_s28 + $0x58] sm:$0x3]  ;;  %v1770_v5 = vld [vmem:[%s1626_s28 + $0x60] sm:$0xff] }
  0x22   : > { %v245_v37 = vrot.slane %v1684_v31, 1  ;;  %v246_v38 = vrot.slane %v1688_v33, 1  ;;  %v286_v45 = vrot.slane %v1684_v31, 2  ;;  %v287_v46 = vrot.slane %v1688_v33, 2  ;;  %1386 = vmatprep.subr.mxu1 %v870_v44  ;;  %v1773_v6 = vld [vmem:[%s1626_s28 + $0x68] sm:$0xff] }
  0x23   : > { %v285_v32 = vsel %vm275_vm0, %v282_v20, %v284_v27  ;;  %v248_v47 = vrot.slane %v188_v43, 1  ;;  %1341 = vmatpush3.msra.mxu0 %v870_v44  ;;  %1391 = vmatpush3.msra.mxu1 %v870_v44  ;;  %v289_v50 = vrot.slane %v188_v43, 2  ;;  %v250_v54 = vrot.slane %v1735_v52, 1  ;;  %v194_v10 = vld [vmem:[%s1626_s28 + $0x70] sm:$0x3]  ;;  %v1807_v20 = vld [vmem:[%s1626_s28 + $0x78] sm:$0xff] }
  0x24   : > { %v247_v41 = vsel %vm234_vm1, %v245_v37, %v246_v38  ;;  %v288_v48 = vsel %vm275_vm0, %v286_v45, %v287_v46  ;;  %v251_v55 = vrot.slane %v1738_v53, 1  ;;  %v291_v58 = vrot.slane %v1735_v52, 2 }
  0x25   : > { %392 = vrot.lane.b32.xlu1 %v280_v13, %s1543_s30  ;;  %344 = vrot.lane.b32.xlu0 %v239_v14, %s1544_s4  ;;  %v249_v49 = vsel %vm234_vm1, %v246_v38, %v248_v47  ;;  %v290_v51 = vsel %vm275_vm0, %v287_v46, %v289_v50  ;;  %v292_v59 = vrot.slane %v1738_v53, 2  ;;  %v253_v60 = vrot.slane %v191_v57, 1 }
  0x26   : > { %v252_v56 = vsel %vm234_vm1, %v250_v54, %v251_v55  ;;  %v294_v63 = vrot.slane %v191_v57, 2  ;;  %v255_v7 = vrot.slane %v1770_v5, 1  ;;  %v256_v8 = vrot.slane %v1773_v6, 1 }
  0x27   : > { %v293_v61 = vsel %vm275_vm0, %v291_v58, %v292_v59  ;;  %v254_v62 = vsel %vm234_vm1, %v251_v55, %v253_v60  ;;  %v296_v11 = vrot.slane %v1770_v5, 2  ;;  %v297_v12 = vrot.slane %v1773_v6, 2  ;;  %v1857_v55 = vld [vmem:[%s1626_s28 + $0x90] sm:$0xff]  ;;  %v1865_v58 = vld [vmem:[%s1626_s28 + $0x98] sm:$0xff] }
  0x28   : > { %v295_v4 = vsel %vm275_vm0, %v292_v59, %v294_v63  ;;  %v257_v9 = vsel %vm234_vm1, %v255_v7, %v256_v8  ;;  %v258_v13 = vrot.slane %v194_v10, 1  ;;  %v299_v16 = vrot.slane %v194_v10, 2 }
  0x29   : > { %346 = vrot.lane.b32.xlu1 %v242_v18, %s1544_s4  ;;  %486 = vrot.lane.b32.xlu0 %v242_v18, %s1545_s5  ;;  %v298_v14 = vsel %vm275_vm0, %v296_v11, %v297_v12  ;;  %v260_v24 = vrot.slane %v1807_v20, 1  ;;  %v301_v34 = vrot.slane %v1807_v20, 2  ;;  %v265_v63 = vrot.slane %v1857_v55, 1 }
  0x2a   : > { %v259_v15 = vsel %vm234_vm1, %v256_v8, %v258_v13  ;;  %v300_v17 = vsel %vm275_vm0, %v297_v12, %v299_v16 }
  0x2d   : > { %534 = vrot.lane.b32.xlu1 %v283_v22, %s1546_s10  ;;  %488 = vrot.lane.b32.xlu0 %v244_v23, %s1545_s5 }
  0x31   : > { %394 = vrot.lane.b32.xlu1 %v283_v22, %s1543_s30  ;;  %348 = vrot.lane.b32.xlu0 %v244_v23, %s1544_s4  ;;  %v1810_v23 = vld [vmem:[%s1626_s28 + $0x80] sm:$0xff] }
  0x32   : > { %v261_v25 = vrot.slane %v1810_v23, 1  ;;  %v302_v35 = vrot.slane %v1810_v23, 2 }
  0x34   : > { %v262_v28 = vsel %vm234_vm1, %v260_v24, %v261_v25  ;;  %v303_v39 = vsel %vm275_vm0, %v301_v34, %v302_v35 }
  0x35   : > { %582 = vrot.lane.b32.xlu1 %v1684_v31, %s1547_s6  ;;  %536 = vrot.lane.b32.xlu0 %v285_v32, %s1546_s10 }
  0x39   : > { %442 = vrot.lane.b32.xlu1 %v1684_v31, %s1542_s29  ;;  %396 = vrot.lane.b32.xlu0 %v285_v32, %s1543_s30  ;;  %v197_v32 = vld [vmem:[%s1626_s28 + $0x88] sm:$0x3] }
  0x3a   : > { %v263_v36 = vrot.slane %v197_v32, 1  ;;  %v304_v43 = vrot.slane %v197_v32, 2 }
  0x3c   : > { %v264_v40 = vsel %vm234_vm1, %v261_v25, %v263_v36  ;;  %v305_v46 = vsel %vm275_vm0, %v302_v35, %v304_v43 }
  0x3d   : > { %630 = vrot.lane.b32.xlu1 %v247_v41, %s1548_s17  ;;  %584 = vrot.lane.b32.xlu0 %v1688_v33, %s1547_s6 }
  0x41   : > { %490 = vrot.lane.b32.xlu1 %v247_v41, %s1545_s5  ;;  %444 = vrot.lane.b32.xlu0 %v1688_v33, %s1542_s29 }
  0x45   : > { %678 = vrot.lane.b32.xlu1 %v288_v48, %s1549_s24  ;;  %632 = vrot.lane.b32.xlu0 %v249_v49, %s1548_s17 }
  0x49   : > { %492 = vrot.lane.b32.xlu1 %v249_v49, %s1545_s5  ;;  %350 = vrot.lane.b32.xlu0 %v247_v41, %s1544_s4 }
  0x4d   : > { %680 = vrot.lane.b32.xlu1 %v290_v51, %s1549_s24  ;;  %538 = vrot.lane.b32.xlu0 %v288_v48, %s1546_s10 }
  0x51   : > { %398 = vrot.lane.b32.xlu1 %v288_v48, %s1543_s30  ;;  %352 = vrot.lane.b32.xlu0 %v249_v49, %s1544_s4 }
  0x55   : > { %586 = vrot.lane.b32.xlu1 %v1735_v52, %s1547_s6  ;;  %540 = vrot.lane.b32.xlu0 %v290_v51, %s1546_s10 }
  0x59   : > { %446 = vrot.lane.b32.xlu1 %v1735_v52, %s1542_s29  ;;  %400 = vrot.lane.b32.xlu0 %v290_v51, %s1543_s30 }
  0x5d   : > { %634 = vrot.lane.b32.xlu1 %v252_v56, %s1548_s17  ;;  %588 = vrot.lane.b32.xlu0 %v1738_v53, %s1547_s6 }
  0x61   : > { %494 = vrot.lane.b32.xlu1 %v252_v56, %s1545_s5  ;;  %448 = vrot.lane.b32.xlu0 %v1738_v53, %s1542_s29 }
  0x65   : > { %682 = vrot.lane.b32.xlu1 %v293_v61, %s1549_s24  ;;  %636 = vrot.lane.b32.xlu0 %v254_v62, %s1548_s17 }
  0x69   : > { %496 = vrot.lane.b32.xlu1 %v254_v62, %s1545_s5  ;;  %354 = vrot.lane.b32.xlu0 %v252_v56, %s1544_s4 }
  0x6d   : > { %684 = vrot.lane.b32.xlu1 %v295_v4, %s1549_s24  ;;  %542 = vrot.lane.b32.xlu0 %v293_v61, %s1546_s10 }
  0x71   : > { %402 = vrot.lane.b32.xlu1 %v293_v61, %s1543_s30  ;;  %356 = vrot.lane.b32.xlu0 %v254_v62, %s1544_s4 }
  0x75   : > { %590 = vrot.lane.b32.xlu1 %v1770_v5, %s1547_s6  ;;  %544 = vrot.lane.b32.xlu0 %v295_v4, %s1546_s10 }
  0x79   : > { %450 = vrot.lane.b32.xlu1 %v1770_v5, %s1542_s29  ;;  %404 = vrot.lane.b32.xlu0 %v295_v4, %s1543_s30  ;;  %v266_v4 = vrot.slane %v1865_v58, 1 }
  0x7b   : > { %v267_v11 = vsel %vm234_vm1, %v265_v63, %v266_v4 }
  0x7d   : > { %638 = vrot.lane.b32.xlu1 %v257_v9, %s1548_s17  ;;  %592 = vrot.lane.b32.xlu0 %v1773_v6, %s1547_s6 }
  0x81   : > { %498 = vrot.lane.b32.xlu1 %v257_v9, %s1545_s5  ;;  %452 = vrot.lane.b32.xlu0 %v1773_v6, %s1542_s29 }
  0x85   : > { %686 = vrot.lane.b32.xlu1 %v298_v14, %s1549_s24  ;;  %640 = vrot.lane.b32.xlu0 %v259_v15, %s1548_s17 }
  0x89   : > { %500 = vrot.lane.b32.xlu1 %v259_v15, %s1545_s5  ;;  %358 = vrot.lane.b32.xlu0 %v257_v9, %s1544_s4 }
  0x8d   : > { %688 = vrot.lane.b32.xlu1 %v300_v17, %s1549_s24  ;;  %546 = vrot.lane.b32.xlu0 %v298_v14, %s1546_s10 }
  0x8f   : > { %v1802_v18 = vpop.permute.xlu1 %440  ;;  %v439_v19 = vpop.permute.xlu0 %438 }
  0x91   : > { %406 = vrot.lane.b32.xlu1 %v298_v14, %s1543_s30  ;;  %360 = vrot.lane.b32.xlu0 %v259_v15, %s1544_s4  ;;  %v200_v15 = vld [vmem:[%s1626_s28 + $0xa0] sm:$0x3] }
  0x92   : > { %v309_v35 = vrot.slane %v200_v15, 2 }
  0x93   : > { %v391_v21 = vpop.permute.xlu1 %390  ;;  %v343_v22 = vpop.permute.xlu0 %342 }
  0x94   : > { %v727_v49 = vsel %vm726_vm2, %v1635_v2, %v343_v22  ;;  %v268_v22 = vrot.slane %v200_v15, 1 }
  0x95   : > { %594 = vrot.lane.b32.xlu1 %v1807_v20, %s1547_s6  ;;  %548 = vrot.lane.b32.xlu0 %v300_v17, %s1546_s10  ;;  %v744_v54 = vsel %vm743_vm3, %v727_v49, %v391_v21  ;;  %v306_v21 = vrot.slane %v1857_v55, 2  ;;  %v1932_v49 = vld [vmem:[%s1626_s28 + $0xa8] sm:$0xff] }
  0x96   : > { %v761_v2 = vsel %vm760_vm4, %v744_v54, %v439_v19 }
  0x97   : > { %v1817_v26 = vpop.permute.xlu1 %392  ;;  %v345_v27 = vpop.permute.xlu0 %344 }
  0x98   : > { %v728_v60 = vsel %vm726_vm2, %v1642_v3, %v345_v27 }
  0x99   : > { %454 = vrot.lane.b32.xlu1 %v1807_v20, %s1542_s29  ;;  %408 = vrot.lane.b32.xlu0 %v300_v17, %s1543_s30  ;;  %v745_v3 = vsel %vm743_vm3, %v728_v60, %v1817_v26 }
  0x9a   : > { %v762_v12 = vsel %vm760_vm4, %v745_v3, %v1802_v18  ;;  %v307_v18 = vrot.slane %v1865_v58, 2 }
  0x9b   : > { %v1823_v29 = vpop.permute.xlu1 %346  ;;  %v487_v30 = vpop.permute.xlu0 %486 }
  0x9c   : > { %v778_v59 = vsel %vm777_vm5, %v761_v2, %v487_v30  ;;  %v269_v30 = vsel %vm234_vm1, %v266_v4, %v268_v22  ;;  %v1941_v2 = vld [vmem:[%s1626_s28 + $0xb0] sm:$0xff] }
  0x9d   : > { %642 = vrot.lane.b32.xlu1 %v262_v28, %s1548_s17  ;;  %596 = vrot.lane.b32.xlu0 %v1810_v23, %s1547_s6 }
  0x9f   : > { %v535_v37 = vpop.permute.xlu1 %534  ;;  %v489_v38 = vpop.permute.xlu0 %488 }
  0xa0   : > { %v795_v61 = vsel %vm794_vm6, %v778_v59, %v535_v37  ;;  %v779_v16 = vsel %vm777_vm5, %v762_v12, %v489_v38  ;;  %v310_v38 = vsel %vm275_vm0, %v307_v18, %v309_v35  ;;  %v271_v59 = vrot.slane %v1941_v2, 1 }
  0xa1   : > { %502 = vrot.lane.b32.xlu1 %v262_v28, %s1545_s5  ;;  %456 = vrot.lane.b32.xlu0 %v1810_v23, %s1542_s29 }
  0xa3   : > { %v1836_v41 = vpop.permute.xlu1 %394  ;;  %v1838_v42 = vpop.permute.xlu0 %348 }
  0xa4   : > { %v730_v63 = vsel %vm726_vm2, %v1629_v0, %v1838_v42  ;;  %v203_v0 = vld [vmem:[%s1626_s28 + $0xb8] sm:$0x3] }
  0xa5   : > { %690 = vrot.lane.b32.xlu1 %v303_v39, %s1549_s24  ;;  %644 = vrot.lane.b32.xlu0 %v264_v40, %s1548_s17  ;;  %v273_v12 = vrot.slane %v203_v0, 1 }
  0xa7   : > { %v583_v44 = vpop.permute.xlu1 %582  ;;  %v537_v45 = vpop.permute.xlu0 %536 }
  0xa8   : > { %v812_v62 = vsel %vm811_vm7, %v795_v61, %v583_v44  ;;  %v796_v17 = vsel %vm794_vm6, %v779_v16, %v537_v45  ;;  %v729_v45 = vsel %vm726_vm2, %v1632_v1, %v1823_v29 }
  0xa9   : > { %504 = vrot.lane.b32.xlu1 %v264_v40, %s1545_s5  ;;  %362 = vrot.lane.b32.xlu0 %v262_v28, %s1544_s4  ;;  %v308_v28 = vsel %vm275_vm0, %v306_v21, %v307_v18  ;;  %v274_v21 = vsel %vm234_vm1, %v271_v59, %v273_v12 }
  0xab   : > { %v1845_v47 = vpop.permute.xlu1 %442  ;;  %v1847_v48 = vpop.permute.xlu0 %396 }
  0xac   : > { %v747_v4 = vsel %vm743_vm3, %v730_v63, %v1847_v48 }
  0xad   : > { %692 = vrot.lane.b32.xlu1 %v305_v46, %s1549_s24  ;;  %550 = vrot.lane.b32.xlu0 %v303_v39, %s1546_s10 }
  0xaf   : > { %v631_v50 = vpop.permute.xlu1 %630  ;;  %v585_v51 = vpop.permute.xlu0 %584 }
  0xb0   : > { %v829_v7 = vsel %vm828_vm8, %v812_v62, %v631_v50  ;;  %v813_v19 = vsel %vm811_vm7, %v796_v17, %v585_v51 }
  0xb1   : > { %410 = vrot.lane.b32.xlu1 %v303_v39, %s1543_s30  ;;  %364 = vrot.lane.b32.xlu0 %v264_v40, %s1544_s4 }
  0xb3   : > { %v1860_v56 = vpop.permute.xlu1 %490  ;;  %v1862_v57 = vpop.permute.xlu0 %444 }
  0xb5   : > { %598 = vrot.lane.b32.xlu1 %v1857_v55, %s1547_s6  ;;  %552 = vrot.lane.b32.xlu0 %v305_v46, %s1546_s10 }
  0xb7   : > { %v679_v8 = vpop.permute.xlu1 %678  ;;  %v633_v9 = vpop.permute.xlu0 %632 }
  0xb8   : > { %v846_v10 = vsel %vm845_vm9, %v829_v7, %v679_v8  ;;  %v830_v24 = vsel %vm828_vm8, %v813_v19, %v633_v9  ;;  %v764_v8 = vsel %vm760_vm4, %v747_v4, %v1862_v57  ;;  %v312_v57 = vrot.slane %v1941_v2, 2  ;;  %v206_v4 = vld [vmem:[%s1626_s28 + $0xd0] sm:$0x3] }
  0xb9   : > { %458 = vrot.lane.b32.xlu1 %v1857_v55, %s1542_s29  ;;  %412 = vrot.lane.b32.xlu0 %v305_v46, %s1543_s30  ;;  %v746_v46 = vsel %vm743_vm3, %v729_v45, %v1836_v41 }
  0xba   : > { %1342 = vmatprep.mubr.msk.f32.mxu0 %vm871_vm10, %v846_v10  ;;  %v763_v50 = vsel %vm760_vm4, %v746_v46, %v1845_v47  ;;  %v270_v47 = vrot.slane %v1932_v49, 1 }
  0xbb   : > { %v1888_v13 = vpop.permute.xlu1 %492  ;;  %v1890_v14 = vpop.permute.xlu0 %350  ;;  %v780_v1 = vsel %vm777_vm5, %v763_v50, %v1860_v56  ;;  %v205_v50 = vld [vmem:[%s1626_s28 + $0xc8] sm:$0xff] }
  0xbc   : > { %v272_v7 = vsel %vm234_vm1, %v270_v47, %v271_v59  ;;  %v781_v42 = vsel %vm777_vm5, %v764_v8, %v1888_v13  ;;  %v325_v8 = vrot.slane %v205_v50, 2 }
  0xbd   : > { %646 = vrot.lane.b32.xlu1 %v267_v11, %s1548_s17  ;;  %600 = vrot.lane.b32.xlu0 %v1865_v58, %s1547_s6 }
  0xbf   : > { %v681_v25 = vpop.permute.xlu1 %680  ;;  %v539_v26 = vpop.permute.xlu0 %538 }
  0xc0   : > { %v847_v27 = vsel %vm845_vm9, %v830_v24, %v681_v25  ;;  %v797_v29 = vsel %vm794_vm6, %v780_v1, %v539_v26  ;;  %v314_v24 = vrot.slane %v203_v0, 2  ;;  %v322_v0 = vrot.slane %v206_v4, 1 }
  0xc1   : > { %506 = vrot.lane.b32.xlu1 %v267_v11, %s1545_s5  ;;  %460 = vrot.lane.b32.xlu0 %v1865_v58, %s1542_s29 }
  0xc2   : > { %1343 = vmatmul.mubr.msk.f32.vlgmr.msra.gmra.mrb[0].mxu0 %vm871_vm10, %v847_v27  ;;  %v315_v27 = vsel %vm275_vm0, %v312_v57, %v314_v24  ;;  %v208_v24 = vld [vmem:[%s1626_s28 + $0xe0] sm:$0xff] }
  0xc3   : > { %v1909_v32 = vpop.permute.xlu1 %398  ;;  %v1911_v34 = vpop.permute.xlu0 %352 }
  0xc5   : > { %694 = vrot.lane.b32.xlu1 %v308_v28, %s1549_s24  ;;  %648 = vrot.lane.b32.xlu0 %v269_v30, %s1548_s17 }
  0xc7   : > { %v587_v36 = vpop.permute.xlu1 %586  ;;  %v541_v37 = vpop.permute.xlu0 %540 }
  0xc8   : > { %v814_v41 = vsel %vm811_vm7, %v797_v29, %v587_v36  ;;  %v798_v10 = vsel %vm794_vm6, %v781_v42, %v541_v37  ;;  %v731_v37 = vsel %vm726_vm2, %v1684_v31, %v1890_v14  ;;  %v320_v29 = vrot.slane %v205_v50, 1 }
  0xc9   : > { %508 = vrot.lane.b32.xlu1 %v269_v30, %s1545_s5  ;;  %366 = vrot.lane.b32.xlu0 %v267_v11, %s1544_s4  ;;  %v311_v11 = vrot.slane %v1932_v49, 2 }
  0xcb   : > { %v1918_v39 = vpop.permute.xlu1 %446  ;;  %v1920_v40 = vpop.permute.xlu0 %400  ;;  %v313_v19 = vsel %vm275_vm0, %v311_v11, %v312_v57  ;;  %v323_v11 = vsel %vm234_vm1, %v320_v29, %v322_v0 }
  0xcd   : > { %696 = vrot.lane.b32.xlu1 %v310_v38, %s1549_s24  ;;  %554 = vrot.lane.b32.xlu0 %v308_v28, %s1546_s10 }
  0xcf   : > { %v635_v43 = vpop.permute.xlu1 %634  ;;  %v589_v44 = vpop.permute.xlu0 %588 }
  0xd0   : > { %v831_v60 = vsel %vm828_vm8, %v814_v41, %v635_v43  ;;  %v815_v48 = vsel %vm811_vm7, %v798_v10, %v589_v44  ;;  %v204_v43 = vld [vmem:[%s1626_s28 + $0xc0] sm:$0xff] }
  0xd1   : > { %414 = vrot.lane.b32.xlu1 %v308_v28, %s1543_s30  ;;  %368 = vrot.lane.b32.xlu0 %v269_v30, %s1544_s4 }
  0xd3   : > { %v1936_v51 = vpop.permute.xlu1 %494  ;;  %v1938_v54 = vpop.permute.xlu0 %448 }
  0xd5   : > { %602 = vrot.lane.b32.xlu1 %v1932_v49, %s1547_s6  ;;  %556 = vrot.lane.b32.xlu0 %v310_v38, %s1546_s10 }
  0xd7   : > { %v683_v61 = vpop.permute.xlu1 %682  ;;  %v637_v62 = vpop.permute.xlu0 %636 }
  0xd8   : > { %v848_v56 = vsel %vm845_vm9, %v831_v60, %v683_v61  ;;  %v832_v15 = vsel %vm828_vm8, %v815_v48, %v637_v62 }
  0xd9   : > { %462 = vrot.lane.b32.xlu1 %v1932_v49, %s1542_s29  ;;  %416 = vrot.lane.b32.xlu0 %v310_v38, %s1543_s30  ;;  %v748_v38 = vsel %vm743_vm3, %v731_v37, %v1909_v32  ;;  %v319_v32 = vrot.slane %v204_v43, 1 }
  0xda   : > { %1345 = vmatprep.mubr.msk.f32.mxu0 %vm871_vm10, %v848_v56  ;;  %v765_v44 = vsel %vm760_vm4, %v748_v38, %v1918_v39 }
  0xdb   : > { %v1966_v9 = vpop.permute.xlu1 %496  ;;  %v1968_v3 = vpop.permute.xlu0 %354  ;;  %v782_v1 = vsel %vm777_vm5, %v765_v44, %v1936_v51  ;;  %v732_v51 = vsel %vm726_vm2, %v1688_v33, %v1911_v34  ;;  %v321_v61 = vsel %vm234_vm1, %v319_v32, %v320_v29  ;;  %v338_v44 = vrot.slane %v208_v24, 2 }
  0xdc   : > { %v749_v60 = vsel %vm743_vm3, %v732_v51, %v1920_v40 }
  0xdd   : > { %650 = vrot.lane.b32.xlu1 %v272_v7, %s1548_s17  ;;  %604 = vrot.lane.b32.xlu0 %v1941_v2, %s1547_s6  ;;  %v766_v62 = vsel %vm760_vm4, %v749_v60, %v1938_v54 }
  0xde   : > { %v783_v33 = vsel %vm777_vm5, %v766_v62, %v1966_v9 }
  0xdf   : > { %v685_v16 = vpop.permute.xlu1 %684  ;;  %v543_v17 = vpop.permute.xlu0 %542 }
  0xe0   : > { %v849_v13 = vsel %vm845_vm9, %v832_v15, %v685_v16  ;;  %v799_v31 = vsel %vm794_vm6, %v782_v1, %v543_v17  ;;  %v327_v15 = vrot.slane %v206_v4, 2 }
  0xe1   : > { %510 = vrot.lane.b32.xlu1 %v272_v7, %s1545_s5  ;;  %464 = vrot.lane.b32.xlu0 %v1941_v2, %s1542_s29 }
  0xe2   : > { %1346 = vmatmul.mubr.msk.f32.gmra.mrb[2].mxu0 %vm871_vm10, %v849_v13  ;;  %v328_v13 = vsel %vm275_vm0, %v325_v8, %v327_v15 }
  0xe3   : > { %v1988_v18 = vpop.permute.xlu1 %402  ;;  %v1990_v22 = vpop.permute.xlu0 %356 }
  0xe5   : > { %698 = vrot.lane.b32.xlu1 %v313_v19, %s1549_s24  ;;  %652 = vrot.lane.b32.xlu0 %v274_v21, %s1548_s17 }
  0xe7   : > { %v591_v25 = vpop.permute.xlu1 %590  ;;  %v545_v26 = vpop.permute.xlu0 %544 }
  0xe8   : > { %v816_v14 = vsel %vm811_vm7, %v799_v31, %v591_v25  ;;  %v800_v34 = vsel %vm794_vm6, %v783_v33, %v545_v26  ;;  %v207_v25 = vld [vmem:[%s1626_s28 + $0xd8] sm:$0xff]  ;;  %v209_v26 = vld [vmem:[%s1626_s28 + $0xe8] sm:$0x3]  ;;  %s2193_s28 = sand.u32 1, %s1532_s13  }
  0xe9   : > { %512 = vrot.lane.b32.xlu1 %v274_v21, %s1545_s5  ;;  %370 = vrot.lane.b32.xlu0 %v272_v7, %s1544_s4  ;;  %v324_v7 = vrot.slane %v204_v43, 2  ;;  %v340_v32 = vrot.slane %v209_v26, 2 }
  0xeb   : > { %v1997_v28 = vpop.permute.xlu1 %450  ;;  %v1999_v30 = vpop.permute.xlu0 %404  ;;  %v326_v9 = vsel %vm275_vm0, %v324_v7, %v325_v8 }
  0xed   : > { %700 = vrot.lane.b32.xlu1 %v315_v27, %s1549_s24  ;;  %558 = vrot.lane.b32.xlu0 %v313_v19, %s1546_s10 }
  0xef   : > { %v639_v35 = vpop.permute.xlu1 %638  ;;  %v593_v36 = vpop.permute.xlu0 %592 }
  0xf0   : > { %v833_v39 = vsel %vm828_vm8, %v816_v14, %v639_v35  ;;  %v817_v40 = vsel %vm811_vm7, %v800_v34, %v593_v36  ;;  %v332_v35 = vrot.slane %v207_v25, 1  ;;  %v335_v36 = vrot.slane %v209_v26, 1 }
  0xf1   : > { %418 = vrot.lane.b32.xlu1 %v313_v19, %s1543_s30  ;;  %372 = vrot.lane.b32.xlu0 %v274_v21, %s1544_s4 }
  0xf3   : > { %v2013_v45 = vpop.permute.xlu1 %498  ;;  %v2015_v46 = vpop.permute.xlu0 %452 }
  0xf5   : > { %606 = vrot.lane.b32.xlu1 %v204_v43, %s1547_s6  ;;  %560 = vrot.lane.b32.xlu0 %v315_v27, %s1546_s10 }
  0xf7   : > { %v687_v41 = vpop.permute.xlu1 %686  ;;  %v641_v47 = vpop.permute.xlu0 %640 }
  0xf8   : > { %v850_v59 = vsel %vm845_vm9, %v833_v39, %v687_v41  ;;  %v834_v54 = vsel %vm828_vm8, %v817_v40, %v641_v47  ;;  %v341_v47 = vsel %vm275_vm0, %v338_v44, %v340_v32 }
  0xf9   : > { %466 = vrot.lane.b32.xlu1 %v204_v43, %s1542_s29  ;;  %420 = vrot.lane.b32.xlu0 %v315_v27, %s1543_s30  ;;  %v333_v27 = vrot.slane %v208_v24, 1  ;;  %v733_v43 = vsel %vm726_vm2, %v1735_v52, %v1968_v3 }
  0xfa   : > { %1348 = vmatprep.mubr.msk.f32.mxu0 %vm871_vm10, %v850_v59  ;;  %v750_v1 = vsel %vm743_vm3, %v733_v43, %v1988_v18 }
  0xfb   : > { %v2037_v56 = vpop.permute.xlu1 %500  ;;  %v2039_v63 = vpop.permute.xlu0 %358  ;;  %v336_v31 = vsel %vm234_vm1, %v333_v27, %v335_v36  ;;  %v334_v14 = vsel %vm234_vm1, %v332_v35, %v333_v27  ;;  %v767_v29 = vsel %vm760_vm4, %v750_v1, %v1997_v28 }
  0xfc   : > { %v784_v52 = vsel %vm777_vm5, %v767_v29, %v2013_v45  ;;  %v734_v45 = vsel %vm726_vm2, %v1738_v53, %v1990_v22  ;;  %v735_v15 = vsel %vm726_vm2, %v1770_v5, %v2039_v63 }
  0xfd   : > { %654 = vrot.lane.b32.xlu1 %v321_v61, %s1548_s17  ;;  %608 = vrot.lane.b32.xlu0 %v205_v50, %s1547_s6  ;;  %v751_v62 = vsel %vm743_vm3, %v734_v45, %v1999_v30 }
  0xfe   : > { %v768_v4 = vsel %vm760_vm4, %v751_v62, %v2015_v46 }
  0xff   : > { %v689_v42 = vpop.permute.xlu1 %688  ;;  %v547_v10 = vpop.permute.xlu0 %546  ;;  %v785_v40 = vsel %vm777_vm5, %v768_v4, %v2037_v56 }
 0x100   : > { %v851_v48 = vsel %vm845_vm9, %v834_v54, %v689_v42  ;;  %v801_v3 = vsel %vm794_vm6, %v784_v52, %v547_v10 }
 0x101   : > { %514 = vrot.lane.b32.xlu1 %v321_v61, %s1545_s5  ;;  %468 = vrot.lane.b32.xlu0 %v205_v50, %s1542_s29  ;;  %v337_v50 = vrot.slane %v207_v25, 2  ;;  %s1272_s29 = sshll.u32 %s2193_s28, 7 }
 0x102   : > { %1349 = vmatmul.mubr.msk.f32.gmra.mrb[4].mxu0 %vm871_vm10, %v851_v48  ;;  %s2197_s30 = scalar_lea.vmem [#allocation2], %s1272_s29 }
 0x103   : > { %v2055_v57 = vpop.permute.xlu1 %406  ;;  %v2057_v12 = vpop.permute.xlu0 %360  ;;  %v339_v59 = vsel %vm275_vm0, %v337_v50, %v338_v44 }
 0x104   : > { %v736_v5 = vsel %vm726_vm2, %v1773_v6, %v2057_v12 }
 0x105   : > { %702 = vrot.lane.b32.xlu1 %v326_v9, %s1549_s24  ;;  %656 = vrot.lane.b32.xlu0 %v323_v11, %s1548_s17 }
 0x107   : > { %v595_v16 = vpop.permute.xlu1 %594  ;;  %v549_v17 = vpop.permute.xlu0 %548 }
 0x108   : > { %v818_v18 = vsel %vm811_vm7, %v801_v3, %v595_v16  ;;  %v802_v7 = vsel %vm794_vm6, %v785_v40, %v549_v17  ;;  %v752_v16 = vsel %vm743_vm3, %v735_v15, %v2055_v57 }
 0x109   : > { %562 = vrot.lane.b32.xlu1 %v326_v9, %s1546_s10  ;;  %516 = vrot.lane.b32.xlu0 %v323_v11, %s1545_s5  ;;  %s1298_s5 = sshll.u32 %s1594_s16, 11 }
 0x10a   : > { %s2218_s27 = scalar_lea.hbm %s2299_s2, %s1298_s5 }
 0x10b   : > { %v455_v19 = vpop.permute.xlu1 %454  ;;  %v2064_v21 = vpop.permute.xlu0 %408 }
 0x10c   : > { %v769_v17 = vsel %vm760_vm4, %v752_v16, %v455_v19  ;;  %v753_v63 = vsel %vm743_vm3, %v736_v5, %v2064_v21 }
 0x10d   : > { %564 = vrot.lane.b32.xlu1 %v328_v13, %s1546_s10  ;;  %704 = vrot.lane.b32.xlu0 %v328_v13, %s1549_s24  ;;  %s1161_s10 = sshll.u32 %s2197_s30, 4  ;;  %s2220_s10 = int_to_ptr.vmem [resolvable:$true] %s1161_s10 }
 0x10e   : > { %s1446_s7 = scalar_lea.vmem %s2220_s10, 2048  ;;  %p1453_p0 = scmp.lt.s32.totalorder %s2220_s10, %s1451_s9 }
 0x10f   : > { %v643_v37 = vpop.permute.xlu1 %642  ;;  %v597_v38 = vpop.permute.xlu0 %596  ;;  %p1447_p11 = scmp.ne.s32.totalorder %s2220_s10, %s1446_s7  ;;  %p1454_p1 = scmp.lt.s32.totalorder %s1452_s11, %s1446_s7 }
 0x110   : > { %v835_v51 = vsel %vm828_vm8, %v818_v18, %v643_v37  ;;  %v819_v53 = vsel %vm811_vm7, %v802_v7, %v597_v38 }
 0x111   : > { %612 = vrot.lane.b32.xlu1 %v208_v24, %s1547_s6  ;;  %610 = vrot.lane.b32.xlu0 %v207_v25, %s1547_s6  ;;  %s1143_s6 = scalar_lea.sflag [#allocation3], %s2193_s28  ;;  %p1448_p12 = pnand %p1447_p11, %p1611_p5 }
 0x112   : > { %p1455_p2 = por %p1454_p1, %p1453_p0 }
 0x113   : > { %v503_v39 = vpop.permute.xlu1 %502  ;;  %v457_v41 = vpop.permute.xlu0 %456  ;;  %p1449_p13 = pneg %p1448_p12 }
 0x114   : > { %v786_v25 = vsel %vm777_vm5, %v769_v17, %v503_v39  ;;  %v770_v57 = vsel %vm760_vm4, %v753_v63, %v457_v41 }
 0x115   : > { %660 = vrot.lane.b32.xlu1 %v336_v31, %s1548_s17  ;;  %658 = vrot.lane.b32.xlu0 %v334_v14, %s1548_s17  ;;  %p1456_p3 = pnand %p1455_p2, %p1449_p13 }
 0x117   : > { %v691_v28 = vpop.permute.xlu1 %690  ;;  %v645_v60 = vpop.permute.xlu0 %644 }
 0x118   : > { %v852_v61 = vsel %vm845_vm9, %v835_v51, %v691_v28  ;;  %v836_v22 = vsel %vm828_vm8, %v819_v53, %v645_v60 }
 0x119   : > { %708 = vrot.lane.b32.xlu1 %v341_v47, %s1549_s24  ;;  %706 = vrot.lane.b32.xlu0 %v339_v59, %s1549_s24 }
 0x11a   : > { %1351 = vmatprep.mubr.msk.f32.mxu0 %vm871_vm10, %v852_v61 }
 0x11b   : > { %v505_v33 = vpop.permute.xlu1 %504  ;;  %v363_v34 = vpop.permute.xlu0 %362 }
 0x11c   : > { %v787_v44 = vsel %vm777_vm5, %v770_v57, %v505_v33  ;;  %v737_v47 = vsel %vm726_vm2, %v1807_v20, %v363_v34 }
 0x11f   : > { %v693_v8 = vpop.permute.xlu1 %692  ;;  %v551_v0 = vpop.permute.xlu0 %550 }
 0x120   : > { %v853_v30 = vsel %vm845_vm9, %v836_v22, %v693_v8  ;;  %v803_v26 = vsel %vm794_vm6, %v786_v25, %v551_v0 }
 0x121   : > { %1352 = vmatmul.mubr.msk.f32.gmra.mrb[6].mxu0 %vm871_vm10, %v853_v30 }
 0x123   : > { %v411_v54 = vpop.permute.xlu1 %410  ;;  %v365_v42 = vpop.permute.xlu0 %364 }
 0x124   : > { %v754_v59 = vsel %vm743_vm3, %v737_v47, %v411_v54  ;;  %v738_v20 = vsel %vm726_vm2, %v1810_v23, %v365_v42 }
 0x127   : > { %v599_v46 = vpop.permute.xlu1 %598  ;;  %v553_v10 = vpop.permute.xlu0 %552 }
 0x128   : > { %v820_v27 = vsel %vm811_vm7, %v803_v26, %v599_v46  ;;  %v804_v50 = vsel %vm794_vm6, %v787_v44, %v553_v10 }
 0x12b   : > { %v459_v48 = vpop.permute.xlu1 %458  ;;  %v413_v9 = vpop.permute.xlu0 %412 }
 0x12c   : > { %v771_v51 = vsel %vm760_vm4, %v754_v59, %v459_v48  ;;  %v755_v34 = vsel %vm743_vm3, %v738_v20, %v413_v9 }
 0x12f   : > { %v647_v11 = vpop.permute.xlu1 %646  ;;  %v601_v56 = vpop.permute.xlu0 %600 }
 0x130   : > { %v837_v35 = vsel %vm828_vm8, %v820_v27, %v647_v11  ;;  %v821_v1 = vsel %vm811_vm7, %v804_v50, %v601_v56 }
 0x133   : > { %v507_v13 = vpop.permute.xlu1 %506  ;;  %v461_v24 = vpop.permute.xlu0 %460 }
 0x134   : > { %v788_v61 = vsel %vm777_vm5, %v771_v51, %v507_v13  ;;  %v772_v53 = vsel %vm760_vm4, %v755_v34, %v461_v24 }
 0x137   : > { %v695_v36 = vpop.permute.xlu1 %694  ;;  %v649_v37 = vpop.permute.xlu0 %648 }
 0x138   : > { %v854_v38 = vsel %vm845_vm9, %v837_v35, %v695_v36  ;;  %v838_v31 = vsel %vm828_vm8, %v821_v1, %v649_v37 }
 0x139   : > { %1354 = vmatprep.mubr.msk.f32.mxu1 %vm871_vm10, %v854_v38 }
 0x13b   : > { %v509_v19 = vpop.permute.xlu1 %508  ;;  %v367_v43 = vpop.permute.xlu0 %366 }
 0x13c   : > { %v789_v0 = vsel %vm777_vm5, %v772_v53, %v509_v19  ;;  %v739_v24 = vsel %vm726_vm2, %v1857_v55, %v367_v43 }
 0x13f   : > { %v697_v14 = vpop.permute.xlu1 %696  ;;  %v555_v32 = vpop.permute.xlu0 %554 }
 0x140   : > { %v855_v6 = vsel %vm845_vm9, %v838_v31, %v697_v14  ;;  %v805_v45 = vsel %vm794_vm6, %v788_v61, %v555_v32 }
 0x141   : > { %1355 = vmatmul.mubr.msk.f32.vlgmr.msra.gmra.mrb[0].mxu1 %vm871_vm10, %v855_v6 }
 0x143   : > { %v415_v12 = vpop.permute.xlu1 %414  ;;  %v369_v21 = vpop.permute.xlu0 %368 }
 0x144   : > { %v756_v25 = vsel %vm743_vm3, %v739_v24, %v415_v12  ;;  %v740_v55 = vsel %vm726_vm2, %v1865_v58, %v369_v21 }
 0x147   : > { %v603_v29 = vpop.permute.xlu1 %602  ;;  %v557_v39 = vpop.permute.xlu0 %556 }
 0x148   : > { %v822_v62 = vsel %vm811_vm7, %v805_v45, %v603_v29  ;;  %v806_v30 = vsel %vm794_vm6, %v789_v0, %v557_v39 }
 0x14b   : > { %v463_v41 = vpop.permute.xlu1 %462  ;;  %v417_v52 = vpop.permute.xlu0 %416 }
 0x14c   : > { %v773_v26 = vsel %vm760_vm4, %v756_v25, %v463_v41  ;;  %v757_v43 = vsel %vm743_vm3, %v740_v55, %v417_v52 }
 0x14f   : > { %v651_v3 = vpop.permute.xlu1 %650  ;;  %v605_v18 = vpop.permute.xlu0 %604 }
 0x150   : > { %v839_v4 = vsel %vm828_vm8, %v822_v62, %v651_v3  ;;  %v823_v54 = vsel %vm811_vm7, %v806_v30, %v605_v18 }
 0x153   : > { %v511_v28 = vpop.permute.xlu1 %510  ;;  %v465_v60 = vpop.permute.xlu0 %464 }
 0x154   : > { %v790_v36 = vsel %vm777_vm5, %v773_v26, %v511_v28  ;;  %v774_v44 = vsel %vm760_vm4, %v757_v43, %v465_v60 }
 0x157   : > { %v699_v33 = vpop.permute.xlu1 %698  ;;  %v653_v40 = vpop.permute.xlu0 %652 }
 0x158   : > { %v856_v7 = vsel %vm845_vm9, %v839_v4, %v699_v33  ;;  %v840_v46 = vsel %vm828_vm8, %v823_v54, %v653_v40 }
 0x159   : > { %1357 = vmatprep.mubr.msk.f32.mxu1 %vm871_vm10, %v856_v7 }
 0x15b   : > { %v513_v22 = vpop.permute.xlu1 %512  ;;  %v371_v8 = vpop.permute.xlu0 %370 }
 0x15c   : > { %v791_v31 = vsel %vm777_vm5, %v774_v44, %v513_v22  ;;  %v741_v41 = vsel %vm726_vm2, %v1932_v49, %v371_v8 }
 0x15f   : > { %v701_v10 = vpop.permute.xlu1 %700  ;;  %v559_v48 = vpop.permute.xlu0 %558 }
 0x160   : > { %v857_v23 = vsel %vm845_vm9, %v840_v46, %v701_v10  ;;  %v807_v37 = vsel %vm794_vm6, %v790_v36, %v559_v48 }
 0x161   : > { %1358 = vmatmul.mubr.msk.f32.gmra.mrb[2].mxu1 %vm871_vm10, %v857_v23 }
 0x163   : > { %v419_v42 = vpop.permute.xlu1 %418  ;;  %v373_v9 = vpop.permute.xlu0 %372 }
 0x164   : > { %v742_v52 = vsel %vm726_vm2, %v1941_v2, %v373_v9  ;;  %v758_v3 = vsel %vm743_vm3, %v741_v41, %v419_v42 }
 0x167   : > { %v607_v11 = vpop.permute.xlu1 %606  ;;  %v561_v56 = vpop.permute.xlu0 %560 }
 0x168   : > { %v824_v38 = vsel %vm811_vm7, %v807_v37, %v607_v11  ;;  %v808_v14 = vsel %vm794_vm6, %v791_v31, %v561_v56 }
 0x16b   : > { %v467_v15 = vpop.permute.xlu1 %466  ;;  %v421_v16 = vpop.permute.xlu0 %420 }
 0x16c   : > { %v759_v18 = vsel %vm743_vm3, %v742_v52, %v421_v16  ;;  %v775_v47 = vsel %vm760_vm4, %v758_v3, %v467_v15 }
 0x16f   : > { %v655_v17 = vpop.permute.xlu1 %654  ;;  %v609_v13 = vpop.permute.xlu0 %608 }
 0x170   : > { %v841_v5 = vsel %vm828_vm8, %v824_v38, %v655_v17  ;;  %v825_v32 = vsel %vm811_vm7, %v808_v14, %v609_v13 }
 0x173   : > { %v515_v27 = vpop.permute.xlu1 %514  ;;  %v469_v35 = vpop.permute.xlu0 %468 }
 0x174   : > { %v776_v59 = vsel %vm760_vm4, %v759_v18, %v469_v35  ;;  %v792_v60 = vsel %vm777_vm5, %v775_v47, %v515_v27 }
 0x177   : > { %v703_v63 = vpop.permute.xlu1 %702  ;;  %v657_v57 = vpop.permute.xlu0 %656 }
 0x178   : > { %v858_v19 = vsel %vm845_vm9, %v841_v5, %v703_v63  ;;  %v842_v6 = vsel %vm828_vm8, %v825_v32, %v657_v57 }
 0x179   : > { %1360 = vmatprep.mubr.msk.f32.mxu1 %vm871_vm10, %v858_v19 }
 0x17b   : > { %v563_v50 = vpop.permute.xlu1 %562  ;;  %v517_v1 = vpop.permute.xlu0 %516 }
 0x17c   : > { %v793_v61 = vsel %vm777_vm5, %v776_v59, %v517_v1  ;;  %v809_v49 = vsel %vm794_vm6, %v792_v60, %v563_v50 }
 0x17f   : > { %v565_v12 = vpop.permute.xlu1 %564  ;;  %v705_v29 = vpop.permute.xlu0 %704 }
 0x180   : > { %v859_v58 = vsel %vm845_vm9, %v842_v6, %v705_v29  ;;  %v810_v45 = vsel %vm794_vm6, %v793_v61, %v565_v12 }
 0x181   : > { %1361 = vmatmul.mubr.msk.f32.gmra.mrb[4].mxu1 %vm871_vm10, %v859_v58 }
 0x183   : > { %v613_v21 = vpop.permute.xlu1 %612  ;;  %v611_v39 = vpop.permute.xlu0 %610 }
 0x184   : > { %v827_v2 = vsel %vm811_vm7, %v810_v45, %v613_v21  ;;  %v826_v62 = vsel %vm811_vm7, %v809_v49, %v611_v39 }
 0x187   : > { %v661_v51 = vpop.permute.xlu1 %660  ;;  %v659_v28 = vpop.permute.xlu0 %658 }
 0x188   : > { %v844_v4 = vsel %vm828_vm8, %v827_v2, %v661_v51  ;;  %v843_v33 = vsel %vm828_vm8, %v826_v62, %v659_v28 }
 0x18b   : > { %v709_v40 = vpop.permute.xlu1 %708  ;;  %v707_v7 = vpop.permute.xlu0 %706 }
 0x18c   : > { %v861_v20 = vsel %vm845_vm9, %v844_v4, %v709_v40  ;;  %v860_v34 = vsel %vm845_vm9, %v843_v33, %v707_v7 }
 0x18d   : > { %1363 = vmatprep.mubr.msk.f32.mxu1 %vm871_vm10, %v860_v34 }
 0x18e   : > { %1364 = vmatmul.mubr.msk.f32.gmra.mrb[6].mxu1 %vm871_vm10, %v861_v20 }
 0x195   : > { %v1344_v53 = vpop.f32.mrb[0].mxu0 }
 0x196   : > { %v1087_v22 = vmul.f32 %v1344_v53, %v1344_v53  ;;  %1127 = vst [vmem:[%s2197_s30 + $0x8] sm:$0xff] %v1344_v53  ;;  %v986_v8 = vpop.f32.mrb[1].mxu0 }
 0x197   : > { %v1065_v0 = vadd.f32 %v1344_v53, %v986_v8  ;;  %v1086_v30 = vmul.f32 %v986_v8, %v986_v8  ;;  %1126 = vst [vmem:[%s2197_s30] sm:$0xff] %v986_v8 }
 0x199   : > { %v1102_v54 = vadd.f32 %v1087_v22, %v1086_v30 }
 0x1b5   : > { %v1347_v46 = vpop.f32.mrb[2].mxu0 }
 0x1b6   : > { %1129 = vst [vmem:[%s2197_s30 + $0x18] sm:$0xff] %v1347_v46  ;;  %v996_v10 = vpop.f32.mrb[3].mxu0  ;;  %v1089_v42 = vmul.f32 %v1347_v46, %v1347_v46 }
 0x1b7   : > { %v1066_v48 = vadd.f32 %v1065_v0, %v996_v10  ;;  %v1088_v23 = vmul.f32 %v996_v10, %v996_v10  ;;  %1128 = vst [vmem:[%s2197_s30 + $0x10] sm:$0xff] %v996_v10 }
 0x1b9   : > { %v1103_v9 = vadd.f32 %v1102_v54, %v1088_v23  ;;  %v1067_v11 = vadd.f32 %v1347_v46, %v1066_v48 }
 0x1bb   : > { %v1104_v56 = vadd.f32 %v1103_v9, %v1089_v42 }
 0x1d5   : > { %v1350_v15 = vpop.f32.mrb[4].mxu0 }
 0x1d6   : > { %1131 = vst [vmem:[%s2197_s30 + $0x28] sm:$0xff] %v1350_v15  ;;  %v1006_v16 = vpop.f32.mrb[5].mxu0  ;;  %v1091_v24 = vmul.f32 %v1350_v15, %v1350_v15 }
 0x1d7   : > { %v1068_v17 = vadd.f32 %v1067_v11, %v1006_v16  ;;  %v1090_v13 = vmul.f32 %v1006_v16, %v1006_v16  ;;  %1130 = vst [vmem:[%s2197_s30 + $0x20] sm:$0xff] %v1006_v16 }
 0x1d9   : > { %v1105_v25 = vadd.f32 %v1104_v56, %v1090_v13  ;;  %v1069_v26 = vadd.f32 %v1350_v15, %v1068_v17 }
 0x1db   : > { %v1106_v27 = vadd.f32 %v1105_v25, %v1091_v24 }
 0x1f4   : > { %v1353_v35 = vpop.f32.mrb[6].mxu0 }
 0x1f5   : > { %1133 = vst [vmem:[%s2197_s30 + $0x38] sm:$0xff] %v1353_v35  ;;  %v1016_v36 = vpop.f32.mrb[7].mxu0  ;;  %v1093_v5 = vmul.f32 %v1353_v35, %v1353_v35 }
 0x1f6   : > { %v1070_v37 = vadd.f32 %v1069_v26, %v1016_v36  ;;  %v1092_v38 = vmul.f32 %v1016_v36, %v1016_v36  ;;  %1132 = vst [vmem:[%s2197_s30 + $0x30] sm:$0xff] %v1016_v36 }
 0x1f8   : > { %v1071_v63 = vadd.f32 %v1353_v35, %v1070_v37  ;;  %v1107_v57 = vadd.f32 %v1106_v27, %v1092_v38 }
 0x1fa   : > { %v1108_v19 = vadd.f32 %v1107_v57, %v1093_v5 }
 0x214   : > { %v1356_v55 = vpop.f32.mrb[0].mxu1 }
 0x215   : > { %1135 = vst [vmem:[%s2197_s30 + $0x48] sm:$0xff] %v1356_v55  ;;  %v1026_v43 = vpop.f32.mrb[1].mxu1  ;;  %v1095_v1 = vmul.f32 %v1356_v55, %v1356_v55 }
 0x216   : > { %v1072_v44 = vadd.f32 %v1071_v63, %v1026_v43  ;;  %v1094_v50 = vmul.f32 %v1026_v43, %v1026_v43  ;;  %1134 = vst [vmem:[%s2197_s30 + $0x40] sm:$0xff] %v1026_v43 }
 0x218   : > { %v1109_v31 = vadd.f32 %v1108_v19, %v1094_v50  ;;  %v1073_v14 = vadd.f32 %v1356_v55, %v1072_v44 }
 0x21a   : > { %v1110_v32 = vadd.f32 %v1109_v31, %v1095_v1 }
 0x234   : > { %v1359_v6 = vpop.f32.mrb[2].mxu1 }
 0x235   : > { %1137 = vst [vmem:[%s2197_s30 + $0x58] sm:$0xff] %v1359_v6  ;;  %v1036_v12 = vpop.f32.mrb[3].mxu1  ;;  %v1097_v21 = vmul.f32 %v1359_v6, %v1359_v6 }
 0x236   : > { %v1074_v29 = vadd.f32 %v1073_v14, %v1036_v12  ;;  %v1096_v58 = vmul.f32 %v1036_v12, %v1036_v12  ;;  %1136 = vst [vmem:[%s2197_s30 + $0x50] sm:$0xff] %v1036_v12 }
 0x238   : > { %v1111_v39 = vadd.f32 %v1110_v32, %v1096_v58  ;;  %v1075_v41 = vadd.f32 %v1359_v6, %v1074_v29 }
 0x23a   : > { %v1112_v52 = vadd.f32 %v1111_v39, %v1097_v21 }
 0x254   : > { %v1362_v3 = vpop.f32.mrb[4].mxu1 }
 0x255   : > { %1139 = vst [vmem:[%s2197_s30 + $0x68] sm:$0xff] %v1362_v3  ;;  %v1046_v18 = vpop.f32.mrb[5].mxu1  ;;  %v1099_v51 = vmul.f32 %v1362_v3, %v1362_v3 }
 0x256   : > { %v1076_v47 = vadd.f32 %v1075_v41, %v1046_v18  ;;  %v1098_v59 = vmul.f32 %v1046_v18, %v1046_v18  ;;  %1138 = vst [vmem:[%s2197_s30 + $0x60] sm:$0xff] %v1046_v18 }
 0x258   : > { %v1113_v28 = vadd.f32 %v1112_v52, %v1098_v59  ;;  %v1077_v60 = vadd.f32 %v1362_v3, %v1076_v47 }
 0x25a   : > { %v1114_v61 = vadd.f32 %v1113_v28, %v1099_v51 }
 0x261   : > { %v1365_v49 = vpop.f32.mrb[6].mxu1 }
 0x262   : > { %1141 = vst [vmem:[%s2197_s30 + $0x78] sm:$0xff] %v1365_v49  ;;  %v1056_v45 = vpop.f32.mrb[7].mxu1 }
 0x263   : > { %v1078_v2 = vadd.f32 %v1077_v60, %v1056_v45  ;;  %v1100_v62 = vmul.f32 %v1056_v45, %v1056_v45  ;;  %1140 = vst [vmem:[%s2197_s30 + $0x70] sm:$0xff] %v1056_v45 }
 0x264   : > { %1459 = shalt.err (!%p1456_p3)
}
 0x265   : > { %s1460_s17 = scalar_lea.hbm %s2218_s27, 2048  ;;  %s1464_s24 = scalar_lea.hbm %s2299_s2, 8192 }
 0x266   : > { %p1461_p4 = scmp.ne.s32.totalorder %s2218_s27, %s1460_s17  ;;  %p1465_p9 = scmp.lt.u32.totalorder %s2218_s27, %s2299_s2 }
 0x267   : > { %p1466_p10 = scmp.lt.u32.totalorder %s1464_s24, %s1460_s17  ;;  %p1468_p12 = scmp.lt.u32.totalorder %s1460_s17, %s2218_s27 }
 0x268   : > { %p1462_p7 = pnand %p1461_p4, %p1611_p5 }
 0x269   : > { %p1467_p11 = por %p1466_p10, %p1465_p9 }
 0x26a   : > { %p1463_p8 = pneg %p1462_p7 }
 0x26b   : > { %p1469_p13 = por %p1468_p12, %p1467_p11 }
 0x26d   : > { %p1470_p0 = pnand %p1469_p13, %p1463_p8 }
 0x26f   : > { %1473 = shalt.err (!%p1470_p0)
}
 0x270   : > { %s1551_s5 = smov 128   ;;  %v1101_v4 = vmul.f32 %v1365_v49, %v1365_v49  ;;  %v1079_v33 = vadd.f32 %v1365_v49, %v1078_v2  ;;  %v1115_v40 = vadd.f32 %v1114_v61, %v1100_v62  ;;  %s1273_s25 = sshll.u32 %s2193_s28, 1  ;;  %vm1123_vm11 = vcmask 1040384  }
 0x271   : > { %1393 = dma.vmem_to_hbm [thread:$0]  (%p1611_p5), %s2220_s10, 2048, %s2218_s27, %s1143_s6, %s1551_s5, %s1551_s5, %s1544_s4  }
 0x272   : > { %v1080_v7 = vrot.slane %v1079_v33, 4  ;;  %v1116_v20 = vadd.f32 %v1115_v40, %v1101_v4  ;;  %s1295_s26 = sshll.u32 %s1594_s16, 5  ;;  %s174_s4 = scalar_lea.vmem [#allocation4], %s1273_s25 }
 0x273   : > { %s1177_s10 = sshll.u32 %s174_s4, 4  ;;  %s2254_s7 = scalar_lea.hbm %s2300_s3, %s1295_s26  ;;  %s2256_s10 = int_to_ptr.vmem [resolvable:$true] %s1177_s10 }
 0x274   : > { %v1081_v34 = vadd.f32 %v1080_v7, %v1079_v33  ;;  %v1117_v53 = vrot.slane %v1116_v20, 4  ;;  %s1148_s8 = scalar_lea.sflag [#allocation5], %s2193_s28  ;;  %s1474_s9 = scalar_lea.vmem %s2256_s10, 32 }
 0x275   : > { %p1475_p1 = scmp.ne.s32.totalorder %s2256_s10, %s1474_s9  ;;  %s1552_s16 = smov [#allocation4]  }
 0x276   : > { %v1082_v22 = vrot.slane %v1081_v34, 2  ;;  %v1118_v8 = vadd.f32 %v1117_v53, %v1116_v20  ;;  %s1478_s11 = sshll.u32 %s1552_s16, 4  ;;  %s1479_s11 = int_to_ptr.vmem [resolvable:$false] %s1478_s11 }
 0x277   : > { %p1476_p2 = pnand %p1475_p1, %p1611_p5  ;;  %s1480_s17 = scalar_lea.vmem %s1479_s11, 64 }
 0x278   : > { %v1083_v0 = vadd.f32 %v1082_v22, %v1081_v34  ;;  %v1119_v30 = vrot.slane %v1118_v8, 2  ;;  %p1481_p4 = scmp.lt.s32.totalorder %s2256_s10, %s1479_s11  ;;  %p1482_p7 = scmp.lt.s32.totalorder %s1480_s17, %s1474_s9 }
 0x279   : > { %p1477_p3 = pneg %p1476_p2 }
 0x27a   : > { %v1084_v54 = vrot.slane %v1083_v0, 1  ;;  %v1120_v46 = vadd.f32 %v1119_v30, %v1118_v8  ;;  %p1483_p8 = por %p1482_p7, %p1481_p4 }
 0x27c   : > { %v1121_v10 = vrot.slane %v1120_v46, 1  ;;  %v1085_v48 = vadd.f32 %v1084_v54, %v1083_v0  ;;  %p1484_p9 = pnand %p1483_p8, %p1477_p3 }
 0x27e   : > { %v1122_v23 = vadd.f32 %v1121_v10, %v1120_v46 }
 0x280   : > { %v1124_v42 = vsel %vm1123_vm11, %v1085_v48, %v1122_v23 }
 0x281   : > { %1125 = vst [vmem:[%s174_s4] sm:$0x3] %v1124_v42 }
 0x282   : > { %1487 = shalt.err (!%p1484_p9)
}
 0x283   : > { %s1488_s28 = scalar_lea.hbm %s2254_s7, 32  ;;  %s1492_s24 = scalar_lea.hbm %s2300_s3, 128 }
 0x284   : > { %p1489_p10 = scmp.ne.s32.totalorder %s2254_s7, %s1488_s28  ;;  %p1493_p13 = scmp.lt.u32.totalorder %s2254_s7, %s2300_s3 }
 0x285   : > { %p1494_p0 = scmp.lt.u32.totalorder %s1492_s24, %s1488_s28  ;;  %p1496_p2 = scmp.lt.u32.totalorder %s1488_s28, %s2254_s7 }
 0x286   : > { %p1490_p11 = pnand %p1489_p10, %p1611_p5 }
 0x287   : > { %p1495_p1 = por %p1494_p0, %p1493_p13 }
 0x288   : > { %p1491_p12 = pneg %p1490_p11 }
 0x289   : > { %p1497_p3 = por %p1496_p2, %p1495_p1 }
 0x28b   : > { %p1498_p4 = pnand %p1497_p3, %p1491_p12 }
 0x28d   : > { %1501 = shalt.err (!%p1498_p4)
}
 0x28e   : > { %1394 = dma.vmem_to_hbm [thread:$0]  (%p1611_p5), %s2256_s10, 32, %s2254_s7, %s1148_s8  }
 0x28f PF: > { %p1404_p7 = scmp.ge.s32.totalorder %s1540_s15, 2  ;;  %s1189_s5 = sand.u32 1, %s1528_s12  }
 0x290   : > { %s1190_s25 = scalar_lea.sflag [#allocation3], %s1189_s5 }
 0x291   : > { %p1398_p8 = pnand %p1404_p7, %p1615_p6 }
 0x293   : > { %1519 = dma.done.wait (!%p1398_p8), %s1190_s25, 2048  }
 0x294   : > { %1521 = vsyncadd (!%p1398_p8), %s1190_s25, 4294965248  ;;  %s1199_s26 = scalar_lea.sflag [#allocation5], %s1189_s5 }
 0x295   : > { %1523 = dma.done.wait (!%p1398_p8), %s1199_s26, 32  }
 0x296   : > { %1525 = vsyncadd (!%p1398_p8), %s1199_s26, 4294967264  ;;  %p17_p5 = scmp.ge.s32.totalorder %s1598_s18, 6   ;;  %s2303_s12 = smov %s1532_s13 }
 0x297   : > { %s2304_s13 = smov %s1536_s14  ;;  %s2305_s14 = smov %s1609_s21 }
 0x298   : > { %s2306_s15 = smov %s1598_s18  ;;  %19 = sbr.rel (!%p17_p5) target bundleno = 5 (0x5), region = 80 }
 0x29f   :  { %1204 = vsyncpa [#allocation3], 1 }
 0x2a0   :  { %1206 = vsyncpa [#allocation3 + $0x1], 1 }
 0x2a1   :  { %1207 = vsyncpa [#allocation5], 1 }
 0x2a2   :  { %1209 = vsyncpa [#allocation5 + $0x1], 1 }

</bundles_post_ra>
